<compile_context>
chip_gen: v7x
topology: tpu7x:2x2x1
jax: 0.10.0
libtpu: 0.0.40
codegen_flags: <defaults>
</compile_context>

<pallas_src>
import jax
import jax.numpy as jnp
from jax.experimental import pallas as pl
from jax.experimental.pallas import tpu as pltpu


# --------------------------------------------------------------------------- #
# Kernel
# --------------------------------------------------------------------------- #
def _softq_kernel(x_ref, w1_ref, b1_ref, w2_ref, b2_ref, w3_ref, b3_ref, q_ref):
    """Fused 3-layer MLP: relu(relu(x@W1+b1)@W2+b2)@W3+b3, all in VMEM.

    Accumulation, bias-add and ReLU are f32 (preferred_element_type); weights
    are used as stored (optionally pre-cast once in prepare_params), and the
    Q output is cast to the output ref dtype on store.
    """
    x = x_ref[...]

    h1 = jnp.dot(x, w1_ref[...], preferred_element_type=jnp.float32)
    h1 = jnp.maximum(h1 + b1_ref[...], 0.0)

    h2 = jnp.dot(h1, w2_ref[...], preferred_element_type=jnp.float32)
    h2 = jnp.maximum(h2 + b2_ref[...], 0.0)

    q = jnp.dot(h2, w3_ref[...], preferred_element_type=jnp.float32)
    q_ref[...] = (q + b3_ref[...]).astype(q_ref.dtype)


# --------------------------------------------------------------------------- #
# Param preparation (done once, NOT per forward call)
# --------------------------------------------------------------------------- #
def prepare_params(params, compute_dtype=None):
    """Transpose PyTorch-style (out, in) weights to (in, out) and reshape
    biases to (1, out) rows.  No lane padding of the output layer: the kernel
    writes the true action_dim columns directly.

    compute_dtype: optional dtype to pre-cast the weights to (e.g. bf16 when
    streaming bf16 obs).  Biases stay f32 (added to the f32 accumulator).
    """
    (w1, b1), (w2, b2), (w3, b3) = params

    def prep_w(w):
        wt = jnp.asarray(w).T
        return wt.astype(compute_dtype) if compute_dtype is not None else wt

    def prep_b(b):
        return jnp.asarray(b).reshape(1, -1).astype(jnp.float32)

    return {
        "w1t": prep_w(w1), "b1r": prep_b(b1),
        "w2t": prep_w(w2), "b2r": prep_b(b2),
        "w3t": prep_w(w3), "b3r": prep_b(b3),
        "action_dim": int(w3.shape[0]),
    }


def _round_up(x, m):
    return -(-x // m) * m


def _num_tensorcores():
    """Best-effort TC count per chip (v7x has 2); defaults to 1."""
    try:
        kind = jax.devices()[0].device_kind.lower()
        if "v7" in kind:
            return 2
    except Exception:
        pass
    return 1


def _pick_batch_tile(batch, requested=None, *, sublane=8, target=4096, num_cores=1):
    """Pick a sublane-aligned batch tile.

    * Single-TC parts: whole batch in one step when it fits under `target`
      (per-step overhead ~0.35 us buys nothing without a second core).
    * Multi-TC parts (v7x): split into >= num_cores tiles when B >= 1024 so
      the "parallel" batch axis shards across both TensorCores.
    * Always a multiple of `sublane`; the wrapper pads B up to a multiple of
      the tile, so divisibility of the raw batch is never required.
    """
    if requested is not None:
        return max(sublane, _round_up(int(requested), sublane))
    bt = _round_up(batch, sublane)
    if num_cores > 1 and batch >= 1024:
        bt = _round_up(-(-batch // num_cores), sublane)
    return min(bt, _round_up(target, sublane))


# --------------------------------------------------------------------------- #
# Forward
# --------------------------------------------------------------------------- #
def soft_q_forward(obs, prepared, *, batch_tile=None):
    """Run SoftQNetwork.forward(obs) with a single fused Pallas kernel.

    obs:      (B, obs_dim) float32 or bfloat16
    prepared: output of prepare_params(params)
    Returns:  (B, action_dim) Q values in obs.dtype
    """
    B, obs_dim = obs.shape
    w1t, b1r = prepared["w1t"], prepared["b1r"]
    w2t, b2r = prepared["w2t"], prepared["b2r"]
    w3t, b3r = prepared["w3t"], prepared["b3r"]
    h1_dim = w1t.shape[1]
    h2_dim = w2t.shape[1]
    action_dim = prepared["action_dim"]

    sublane = 16 if obs.dtype == jnp.bfloat16 else 8
    bt = _pick_batch_tile(B, batch_tile, sublane=sublane,
                          num_cores=_num_tensorcores())

    # Pad the batch (rows only, cheap) so the grid tiles it exactly.
    padded_B = _round_up(B, bt)
    obs_in = obs if padded_B == B else jnp.pad(obs, ((0, padded_B - B), (0, 0)))
    grid = (padded_B // bt,)

    def fixed(shape):
        # Weights / biases: grid-invariant full blocks (resident in VMEM).
        return pl.BlockSpec(shape, lambda i: (0, 0))

    itemsize = obs.dtype.itemsize
    param_bytes = sum(int(a.size) * a.dtype.itemsize
                      for a in (w1t, b1r, w2t, b2r, w3t, b3r))
    cost = pl.CostEstimate(
        flops=2 * B * (obs_dim * h1_dim + h1_dim * h2_dim + h2_dim * action_dim),
        transcendentals=0,
        bytes_accessed=B * obs_dim * itemsize + B * action_dim * itemsize + param_bytes,
    )

    q = pl.pallas_call(
        _softq_kernel,
        out_shape=jax.ShapeDtypeStruct((padded_B, action_dim), obs.dtype),
        grid=grid,
        in_specs=[
            pl.BlockSpec((bt, obs_dim), lambda i: (i, 0)),   # obs tile (streamed)
            fixed((obs_dim, h1_dim)),
            fixed((1, h1_dim)),
            fixed((h1_dim, h2_dim)),
            fixed((1, h2_dim)),
            fixed((h2_dim, action_dim)),
            fixed((1, action_dim)),
        ],
        out_specs=pl.BlockSpec((bt, action_dim), lambda i: (i, 0)),
        compiler_params=pltpu.CompilerParams(
            dimension_semantics=("parallel",),
            vmem_limit_bytes=32 * 1024 * 1024,
        ),
        cost_estimate=cost,
    )(obs_in, w1t, b1r, w2t, b2r, w3t, b3r)

    return q if padded_B == B else q[:B]


# --------------------------------------------------------------------------- #
# Synthetic init (stands in for layer_init's orthogonal init)
# --------------------------------------------------------------------------- #
def init_params(key, obs_dim, net_arch, action_dim):
    dims = [obs_dim] + list(net_arch) + [action_dim]
    params = []
    for fan_in, fan_out in zip(dims[:-1], dims[1:]):
        key, wk = jax.random.split(key)
        w = jax.random.normal(wk, (fan_out, fan_in), jnp.float32) / jnp.sqrt(
            jnp.float32(fan_in)
        )
        b = jnp.zeros((fan_out,), jnp.float32)  # layer_init sets bias to 0
        params.append((w, b))
    return params


if __name__ == "__main__":
    key = jax.random.PRNGKey(0)
    B, obs_dim, action_dim = 256, 32, 6
    net_arch = [64, 64]

    k_obs, k_params = jax.random.split(key)
    obs = jax.random.normal(k_obs, (B, obs_dim), jnp.float32)
    params = init_params(k_params, obs_dim, net_arch, action_dim)

    # Param prep happens once (hoisted out of the forward path).
    prepared = prepare_params(params)

    # Default picker: whole batch in one step on v5e/v6e, split across both
    # TensorCores on v7x for large batches; tiles are always multiples of 8.
    q = soft_q_forward(obs, prepared)
    q = jax.block_until_ready(q)

    # Pure-JAX reference of the PyTorch forward.
    (w1, b1), (w2, b2), (w3, b3) = params
    h1 = jnp.maximum(obs @ w1.T + b1, 0.0)
    h2 = jnp.maximum(h1 @ w2.T + b2, 0.0)
    q_ref = h2 @ w3.T + b3

    assert q.shape == (B, action_dim)
    assert jnp.allclose(q, q_ref, atol=1e-4, rtol=1e-5)

    # Also exercise a non-divisible batch with an explicit tile (row padding path).
    obs_odd = obs[:130]
    q_odd = jax.block_until_ready(soft_q_forward(obs_odd, prepared, batch_tile=64))
    assert q_odd.shape == (130, action_dim)
    assert jnp.allclose(q_odd, q_ref[:130], atol=1e-4, rtol=1e-5)

    print("KERNEL_OK")
</pallas_src>

<mosaic_0001>
module attributes {stable_mosaic.version = 11 : i64} {
  func.func @_softq_kernel(%arg0: i32, %arg1: memref<256x32xf32, #tpu.memory_space<vmem>>, %arg2: memref<32x64xf32, #tpu.memory_space<vmem>>, %arg3: memref<1x64xf32, #tpu.memory_space<vmem>>, %arg4: memref<64x64xf32, #tpu.memory_space<vmem>>, %arg5: memref<1x64xf32, #tpu.memory_space<vmem>>, %arg6: memref<64x6xf32, #tpu.memory_space<vmem>>, %arg7: memref<1x6xf32, #tpu.memory_space<vmem>>, %arg8: memref<256x6xf32, #tpu.memory_space<vmem>>) attributes {dimension_semantics = [#tpu.dimension_semantics<parallel>], iteration_bounds = array<i64: 1>, scalar_prefetch = 0 : i64, scratch_operands = 0 : i64, tpu.core_type = #tpu.core_type<tc>, window_params = [{transform_indices = @transform_0, window_bounds = array<i64: 256, 32>}, {pipeline_mode = #tpu.pipeline_mode<synchronous>, transform_indices = @transform_1, window_bounds = array<i64: 32, 64>}, {pipeline_mode = #tpu.pipeline_mode<synchronous>, transform_indices = @transform_2, window_bounds = array<i64: 1, 64>}, {pipeline_mode = #tpu.pipeline_mode<synchronous>, transform_indices = @transform_3, window_bounds = array<i64: 64, 64>}, {pipeline_mode = #tpu.pipeline_mode<synchronous>, transform_indices = @transform_4, window_bounds = array<i64: 1, 64>}, {pipeline_mode = #tpu.pipeline_mode<synchronous>, transform_indices = @transform_5, window_bounds = array<i64: 64, 6>}, {pipeline_mode = #tpu.pipeline_mode<synchronous>, transform_indices = @transform_6, window_bounds = array<i64: 1, 6>}, {transform_indices = @transform_7, window_bounds = array<i64: 256, 6>}]} {
    %c0 = arith.constant 0 : index
    %c0_0 = arith.constant 0 : index
    %0 = vector.load %arg1[%c0, %c0_0] : memref<256x32xf32, #tpu.memory_space<vmem>>, vector<256x32xf32>
    %c0_1 = arith.constant 0 : index
    %c0_2 = arith.constant 0 : index
    %1 = vector.load %arg2[%c0_1, %c0_2] : memref<32x64xf32, #tpu.memory_space<vmem>>, vector<32x64xf32>
    %cst = arith.constant dense<0.000000e+00> : vector<256x64xf32>
    %2 = tpu.matmul %0, %1, %cst {dimension_numbers = #tpu.dot_dimension_numbers<[1], [0], [0], [1], [0, 0, 1, 1], [], []>} : vector<256x32xf32>, vector<32x64xf32>, vector<256x64xf32> -> vector<256x64xf32>
    %c0_3 = arith.constant 0 : index
    %c0_4 = arith.constant 0 : index
    %3 = vector.load %arg3[%c0_3, %c0_4] : memref<1x64xf32, #tpu.memory_space<vmem>>, vector<1x64xf32>
    %4 = vector.broadcast %3 : vector<1x64xf32> to vector<256x64xf32>
    %5 = arith.addf %2, %4 : vector<256x64xf32>
    %cst_5 = arith.constant 0.000000e+00 : f32
    %6 = vector.broadcast %cst_5 : f32 to vector<256x64xf32>
    %7 = arith.maximumf %5, %6 : vector<256x64xf32>
    %c0_6 = arith.constant 0 : index
    %c0_7 = arith.constant 0 : index
    %8 = vector.load %arg4[%c0_6, %c0_7] : memref<64x64xf32, #tpu.memory_space<vmem>>, vector<64x64xf32>
    %cst_8 = arith.constant dense<0.000000e+00> : vector<256x64xf32>
    %9 = tpu.matmul %7, %8, %cst_8 {dimension_numbers = #tpu.dot_dimension_numbers<[1], [0], [0], [1], [0, 0, 1, 1], [], []>} : vector<256x64xf32>, vector<64x64xf32>, vector<256x64xf32> -> vector<256x64xf32>
    %c0_9 = arith.constant 0 : index
    %c0_10 = arith.constant 0 : index
    %10 = vector.load %arg5[%c0_9, %c0_10] : memref<1x64xf32, #tpu.memory_space<vmem>>, vector<1x64xf32>
    %11 = vector.broadcast %10 : vector<1x64xf32> to vector<256x64xf32>
    %12 = arith.addf %9, %11 : vector<256x64xf32>
    %cst_11 = arith.constant 0.000000e+00 : f32
    %13 = vector.broadcast %cst_11 : f32 to vector<256x64xf32>
    %14 = arith.maximumf %12, %13 : vector<256x64xf32>
    %c0_12 = arith.constant 0 : index
    %c0_13 = arith.constant 0 : index
    %15 = vector.load %arg6[%c0_12, %c0_13] : memref<64x6xf32, #tpu.memory_space<vmem>>, vector<64x6xf32>
    %cst_14 = arith.constant dense<0.000000e+00> : vector<256x6xf32>
    %16 = tpu.matmul %14, %15, %cst_14 {dimension_numbers = #tpu.dot_dimension_numbers<[1], [0], [0], [1], [0, 0, 1, 1], [], []>} : vector<256x64xf32>, vector<64x6xf32>, vector<256x6xf32> -> vector<256x6xf32>
    %c0_15 = arith.constant 0 : index
    %c0_16 = arith.constant 0 : index
    %17 = vector.load %arg7[%c0_15, %c0_16] : memref<1x6xf32, #tpu.memory_space<vmem>>, vector<1x6xf32>
    %18 = vector.broadcast %17 : vector<1x6xf32> to vector<256x6xf32>
    %19 = arith.addf %16, %18 : vector<256x6xf32>
    %c0_17 = arith.constant 0 : index
    %c0_18 = arith.constant 0 : index
    %20 = vector.load %arg8[%c0_17, %c0_18] : memref<256x6xf32, #tpu.memory_space<vmem>>, vector<256x6xf32>
    tpu.vector_store %arg8[%c0_17, %c0_18], %19 {strides = array<i32>} : memref<256x6xf32, #tpu.memory_space<vmem>>, vector<256x6xf32>,
    return
  }
  func.func @transform_0(%arg0: i32) -> (i32, i32) {
    %c0_i32 = arith.constant 0 : i32
    %c0_i32_0 = arith.constant 0 : i32
    return %arg0, %c0_i32 : i32, i32
  }
  func.func @transform_1(%arg0: i32) -> (i32, i32) {
    %c0_i32 = arith.constant 0 : i32
    %c0_i32_0 = arith.constant 0 : i32
    %c0_i32_1 = arith.constant 0 : i32
    return %c0_i32, %c0_i32_0 : i32, i32
  }
  func.func @transform_2(%arg0: i32) -> (i32, i32) {
    %c0_i32 = arith.constant 0 : i32
    %c0_i32_0 = arith.constant 0 : i32
    %c0_i32_1 = arith.constant 0 : i32
    return %c0_i32, %c0_i32_0 : i32, i32
  }
  func.func @transform_3(%arg0: i32) -> (i32, i32) {
    %c0_i32 = arith.constant 0 : i32
    %c0_i32_0 = arith.constant 0 : i32
    %c0_i32_1 = arith.constant 0 : i32
    return %c0_i32, %c0_i32_0 : i32, i32
  }
  func.func @transform_4(%arg0: i32) -> (i32, i32) {
    %c0_i32 = arith.constant 0 : i32
    %c0_i32_0 = arith.constant 0 : i32
    %c0_i32_1 = arith.constant 0 : i32
    return %c0_i32, %c0_i32_0 : i32, i32
  }
  func.func @transform_5(%arg0: i32) -> (i32, i32) {
    %c0_i32 = arith.constant 0 : i32
    %c0_i32_0 = arith.constant 0 : i32
    %c0_i32_1 = arith.constant 0 : i32
    return %c0_i32, %c0_i32_0 : i32, i32
  }
  func.func @transform_6(%arg0: i32) -> (i32, i32) {
    %c0_i32 = arith.constant 0 : i32
    %c0_i32_0 = arith.constant 0 : i32
    %c0_i32_1 = arith.constant 0 : i32
    return %c0_i32, %c0_i32_0 : i32, i32
  }
  func.func @transform_7(%arg0: i32) -> (i32, i32) {
    %c0_i32 = arith.constant 0 : i32
    %c0_i32_0 = arith.constant 0 : i32
    return %arg0, %c0_i32 : i32, i32
  }
}

</mosaic_0001>

<bundles_post_ra>
// kernel: tpu_custom_call.1
= control target key start
LH: loop header
LB: loop body
LE: loop exit
PB: predicated region body
PF: predicated region fallthrough
CT: control target
= control target key end

     0   :  { %vm69_vm0 = vcmask 261120   ;;  %vm438_vm1 = vcmask 523264   ;;  %vm1128_vm2 = vcmask 48128   ;;  %s2166_s1 = inlined_call_operand.vmem [shape: f32[32,64], index: 1, kind: input, shape index: {}]   ;;  %s2167_s0 = inlined_call_operand.vmem [shape: f32[256,32], index: 0, kind: input, shape index: {}]   ;;  %s2168_s3 = inlined_call_operand.vmem [shape: f32[64,64], index: 3, kind: input, shape index: {}]   ;;  %s2169_s5 = inlined_call_operand.vmem [shape: f32[64,6], index: 5, kind: input, shape index: {}]   ;;  %s2170_s2 = inlined_call_operand.vmem [shape: f32[1,64], index: 2, kind: input, shape index: {}]   ;;  %s2171_s4 = inlined_call_operand.vmem [shape: f32[1,64], index: 4, kind: input, shape index: {}]   ;;  %s2172_s6 = inlined_call_operand.vmem [shape: f32[1,6], index: 6, kind: input, shape index: {}]   ;;  %s2173_s7 = inlined_call_operand.vmem [shape: f32[256,6], index: 7, kind: output, shape index: {}]  }
   0x1   :  { %v58_v0 = vld [vmem:[%s2166_s1] sm:$0xff]  ;;  %v59_v1 = vld [vmem:[%s2166_s1 + $0x8] sm:$0xff]  ;;  %v60_v2 = vld [vmem:[%s2166_s1 + $0x10] sm:$0xff] }
   0x2   :  { %v1564_v3 = vpack.c.bf16 %v59_v1, %v58_v0  ;;  %v61_v4 = vld [vmem:[%s2166_s1 + $0x18] sm:$0xff]  ;;  %v26_v5 = vld [vmem:[%s2167_s0] sm:$0xff]  ;;  %v27_v8 = vld [vmem:[%s2167_s0 + $0x8] sm:$0xff] }
   0x3   :  { %v1568_v6 = vpack.c.bf16 %v61_v4, %v60_v2  ;;  %1388 = vmatprep.mubr.msk.f32.mxu0 %vm69_vm0, %v26_v5  ;;  %v42_v7 = vld [vmem:[%s2167_s0 + $0x80] sm:$0xff]  ;;  %v43_v9 = vld [vmem:[%s2167_s0 + $0x88] sm:$0xff]  ;;  %v28_v10 = vld [vmem:[%s2167_s0 + $0x10] sm:$0xff] }
   0x4   :  { %1565 = vmatprep.subr.bf16.mxu0 %v1564_v3  ;;  %1604 = vmatprep.subr.bf16.mxu1 %v1564_v3  ;;  %v44_v11 = vld [vmem:[%s2167_s0 + $0x90] sm:$0xff]  ;;  %v29_v12 = vld [vmem:[%s2167_s0 + $0x18] sm:$0xff]  ;;  %v423_v14 = vld [vmem:[%s2168_s3] sm:$0xff] }
   0x5   :  { %1567 = vmatpush3.bf16.msra.mxu0 %v1564_v3  ;;  %1606 = vmatpush3.bf16.msra.mxu1 %v1564_v3  ;;  %v45_v13 = vld [vmem:[%s2167_s0 + $0x98] sm:$0xff]  ;;  %v424_v15 = vld [vmem:[%s2168_s3 + $0x8] sm:$0xff]  ;;  %v30_v16 = vld [vmem:[%s2167_s0 + $0x20] sm:$0xff] }
   0x6   :  { %1569 = vmatprep.subr.bf16.mxu0 %v1568_v6  ;;  %1605 = vmatprep.subr.bf16.mxu1 %v1568_v6  ;;  %v46_v17 = vld [vmem:[%s2167_s0 + $0xa0] sm:$0xff]  ;;  %v1572_v18 = vpack.c.bf16 %v424_v15, %v423_v14  ;;  %v425_v19 = vld [vmem:[%s2168_s3 + $0x10] sm:$0xff]  ;;  %v426_v20 = vld [vmem:[%s2168_s3 + $0x18] sm:$0xff] }
   0x7   :  { %1412 = vmatprep.mubr.msk.f32.mxu1 %vm69_vm0, %v42_v7  ;;  %v31_v21 = vld [vmem:[%s2167_s0 + $0x28] sm:$0xff]  ;;  %v32_v23 = vld [vmem:[%s2167_s0 + $0x30] sm:$0xff]  ;;  %v1576_v25 = vpack.c.bf16 %v426_v20, %v425_v19  ;;  %v427_v26 = vld [vmem:[%s2168_s3 + $0x20] sm:$0xff] }
   0x8   :  { %v47_v22 = vld [vmem:[%s2167_s0 + $0xa8] sm:$0xff]  ;;  %v48_v24 = vld [vmem:[%s2167_s0 + $0xb0] sm:$0xff]  ;;  %v33_v28 = vld [vmem:[%s2167_s0 + $0x38] sm:$0xff] }
   0x9   :  { %1571 = vmatpush3.bf16.msra.mxu0 %v1568_v6  ;;  %1607 = vmatpush3.bf16.msra.mxu1 %v1568_v6  ;;  %v428_v27 = vld [vmem:[%s2168_s3 + $0x28] sm:$0xff]  ;;  %v49_v29 = vld [vmem:[%s2167_s0 + $0xb8] sm:$0xff]  ;;  %v34_v30 = vld [vmem:[%s2167_s0 + $0x40] sm:$0xff] }
   0xa   :  { %1573 = vmatprep.subr.bf16.mxu1 %v1572_v18  ;;  %v50_v31 = vld [vmem:[%s2167_s0 + $0xc0] sm:$0xff]  ;;  %v1580_v32 = vpack.c.bf16 %v428_v27, %v427_v26  ;;  %v429_v33 = vld [vmem:[%s2168_s3 + $0x30] sm:$0xff]  ;;  %v430_v34 = vld [vmem:[%s2168_s3 + $0x38] sm:$0xff] }
   0xb   :  { %v35_v35 = vld [vmem:[%s2167_s0 + $0x48] sm:$0xff]  ;;  %v36_v37 = vld [vmem:[%s2167_s0 + $0x50] sm:$0xff]  ;;  %v1584_v39 = vpack.c.bf16 %v430_v34, %v429_v33  ;;  %v37_v40 = vld [vmem:[%s2167_s0 + $0x58] sm:$0xff] }
   0xc   :  { %1389 = vmatmul.mubr.msk.f32.vlgmr.msra.gmra.mrb[0].mxu0 %vm69_vm0, %v27_v8  ;;  %1413 = vmatmul.mubr.msk.f32.vlgmr.msra.gmra.mrb[0].mxu1 %vm69_vm0, %v43_v9  ;;  %v51_v36 = vld [vmem:[%s2167_s0 + $0xc8] sm:$0xff]  ;;  %v52_v38 = vld [vmem:[%s2167_s0 + $0xd0] sm:$0xff]  ;;  %v53_v41 = vld [vmem:[%s2167_s0 + $0xd8] sm:$0xff] }
   0xd   :  { %1391 = vmatprep.mubr.msk.f32.mxu0 %vm69_vm0, %v28_v10  ;;  %1415 = vmatprep.mubr.msk.f32.mxu1 %vm69_vm0, %v44_v11  ;;  %v38_v42 = vld [vmem:[%s2167_s0 + $0x60] sm:$0xff]  ;;  %v39_v44 = vld [vmem:[%s2167_s0 + $0x68] sm:$0xff]  ;;  %v40_v46 = vld [vmem:[%s2167_s0 + $0x70] sm:$0xff] }
   0xe   :  { %1575 = vmatpush3.bf16.msra.mxu1 %v1572_v18  ;;  %v54_v43 = vld [vmem:[%s2167_s0 + $0xe0] sm:$0xff]  ;;  %v55_v45 = vld [vmem:[%s2167_s0 + $0xe8] sm:$0xff]  ;;  %v56_v47 = vld [vmem:[%s2167_s0 + $0xf0] sm:$0xff] }
   0xf   :  { %1577 = vmatprep.subr.bf16.mxu1 %v1576_v25  ;;  %v41_v48 = vld [vmem:[%s2167_s0 + $0x78] sm:$0xff]  ;;  %v792_v50 = vld [vmem:[%s2169_s5] sm:$0xff]  ;;  %v793_v51 = vld [vmem:[%s2169_s5 + $0x8] sm:$0xff] }
  0x10   :  { %1392 = vmatmul.mubr.msk.f32.gmra.mrb[2].mxu0 %vm69_vm0, %v29_v12  ;;  %1416 = vmatmul.mubr.msk.f32.gmra.mrb[2].mxu1 %vm69_vm0, %v45_v13  ;;  %v57_v49 = vld [vmem:[%s2167_s0 + $0xf8] sm:$0xff]  ;;  %v794_v52 = vld [vmem:[%s2169_s5 + $0x10] sm:$0xff]  ;;  %v1588_v53 = vpack.c.bf16 %v793_v51, %v792_v50  ;;  %v796_v56 = vld [vmem:[%s2169_s5 + $0x20] sm:$0xff] }
  0x11   :  { %1394 = vmatprep.mubr.msk.f32.mxu0 %vm69_vm0, %v30_v16  ;;  %1418 = vmatprep.mubr.msk.f32.mxu1 %vm69_vm0, %v46_v17  ;;  %v795_v54 = vld [vmem:[%s2169_s5 + $0x18] sm:$0xff]  ;;  %v797_v57 = vld [vmem:[%s2169_s5 + $0x28] sm:$0xff]  ;;  %v798_v59 = vld [vmem:[%s2169_s5 + $0x30] sm:$0xff] }
  0x12   :  { %1579 = vmatpush3.bf16.msra.mxu1 %v1576_v25  ;;  %v1592_v55 = vpack.c.bf16 %v795_v54, %v794_v52  ;;  %1589 = vmatprep.subr.bf16.mxu0 %v1588_v53  ;;  %v1596_v58 = vpack.c.bf16 %v797_v57, %v796_v56  ;;  %v799_v60 = vld [vmem:[%s2169_s5 + $0x38] sm:$0xff]  ;;  %v1839_v62 = vld [vmem:[%s2170_s2] ss:$0 sm:$0xff] }
  0x13   :  { %1581 = vmatprep.subr.bf16.mxu1 %v1580_v32  ;;  %1591 = vmatpush3.bf16.msra.mxu0 %v1588_v53  ;;  %v1600_v61 = vpack.c.bf16 %v799_v60, %v798_v59 }
  0x14   :  { %1395 = vmatmul.mubr.msk.f32.gmra.mrb[4].mxu0 %vm69_vm0, %v31_v21  ;;  %1419 = vmatmul.mubr.msk.f32.gmra.mrb[4].mxu1 %vm69_vm0, %v47_v22 }
  0x15   :  { %1397 = vmatprep.mubr.msk.f32.mxu0 %vm69_vm0, %v32_v23  ;;  %1421 = vmatprep.mubr.msk.f32.mxu1 %vm69_vm0, %v48_v24 }
  0x16   :  { %1583 = vmatpush3.bf16.msra.mxu1 %v1580_v32  ;;  %1593 = vmatprep.subr.bf16.mxu0 %v1592_v55 }
  0x17   :  { %1585 = vmatprep.subr.bf16.mxu1 %v1584_v39  ;;  %1595 = vmatpush3.bf16.msra.mxu0 %v1592_v55 }
  0x18   :  { %1398 = vmatmul.mubr.msk.f32.gmra.mrb[6].mxu0 %vm69_vm0, %v33_v28  ;;  %1422 = vmatmul.mubr.msk.f32.gmra.mrb[6].mxu1 %vm69_vm0, %v49_v29 }
  0x19   :  { %1400 = vmatprep.mubr.msk.f32.mxu0 %vm69_vm0, %v34_v30  ;;  %1424 = vmatprep.mubr.msk.f32.mxu1 %vm69_vm0, %v50_v31 }
  0x1a   :  { %1587 = vmatpush3.bf16.msra.mxu1 %v1584_v39  ;;  %1597 = vmatprep.subr.bf16.mxu0 %v1596_v58 }
  0x1b   :  { %1599 = vmatpush3.bf16.msra.mxu0 %v1596_v58 }
  0x1c   :  { %1401 = vmatmul.mubr.msk.f32.gmra.mrb[8].mxu0 %vm69_vm0, %v35_v35  ;;  %1425 = vmatmul.mubr.msk.f32.gmra.mrb[8].mxu1 %vm69_vm0, %v51_v36 }
  0x1d   :  { %1403 = vmatprep.mubr.msk.f32.mxu0 %vm69_vm0, %v36_v37  ;;  %1427 = vmatprep.mubr.msk.f32.mxu1 %vm69_vm0, %v52_v38 }
  0x1e   :  { %1601 = vmatprep.subr.bf16.mxu0 %v1600_v61 }
  0x1f   :  { %1603 = vmatpush3.bf16.msra.mxu0 %v1600_v61 }
  0x20   :  { %1404 = vmatmul.mubr.msk.f32.gmra.mrb[10].mxu0 %vm69_vm0, %v37_v40  ;;  %1428 = vmatmul.mubr.msk.f32.gmra.mrb[10].mxu1 %vm69_vm0, %v53_v41 }
  0x21   :  { %1406 = vmatprep.mubr.msk.f32.mxu0 %vm69_vm0, %v38_v42  ;;  %1430 = vmatprep.mubr.msk.f32.mxu1 %vm69_vm0, %v54_v43 }
  0x24   :  { %1407 = vmatmul.mubr.msk.f32.gmra.mrb[12].mxu0 %vm69_vm0, %v39_v44  ;;  %1431 = vmatmul.mubr.msk.f32.gmra.mrb[12].mxu1 %vm69_vm0, %v55_v45 }
  0x25   :  { %1409 = vmatprep.mubr.msk.f32.mxu0 %vm69_vm0, %v40_v46  ;;  %1433 = vmatprep.mubr.msk.f32.mxu1 %vm69_vm0, %v56_v47 }
  0x28   :  { %1410 = vmatmul.mubr.msk.f32.gmra.mrb[14].mxu0 %vm69_vm0, %v41_v48  ;;  %1434 = vmatmul.mubr.msk.f32.gmra.mrb[14].mxu1 %vm69_vm0, %v57_v49 }
  0xdf   :  { %v1390_v63 = vpop.f32.mrb[0].mxu0  ;;  %v1841_v0 = vpop.f32.mrb[0].mxu1 }
  0xe0   :  { %v238_v1 = vadd.f32 %v1390_v63, %v1839_v62  ;;  %v232_v2 = vpop.f32.mrb[1].mxu0  ;;  %v1844_v3 = vpop.f32.mrb[1].mxu1 }
  0xe1   :  { %v233_v4 = vadd.f32 %v1839_v62, %v232_v2  ;;  %v313_v55 = vadd.f32 %v1839_v62, %v1844_v3  ;;  %v318_v3 = vadd.f32 %v1841_v0, %v1839_v62 }
  0xe2   :  { %v392_v8 = vmax.f32 %v238_v1, 0.0 }
  0xe3   :  { %v391_v5 = vmax.f32 %v233_v4, 0.0  ;;  %v1393_v6 = vpop.f32.mrb[2].mxu0  ;;  %v1847_v7 = vpop.f32.mrb[2].mxu1  ;;  %v407_v1 = vmax.f32 %v313_v55, 0.0 }
  0xe4   :  { %v248_v9 = vadd.f32 %v1393_v6, %v1839_v62  ;;  %v242_v10 = vpop.f32.mrb[3].mxu0  ;;  %v1850_v11 = vpop.f32.mrb[3].mxu1 }
  0xe5   :  { %v243_v12 = vadd.f32 %v1839_v62, %v242_v10  ;;  %1452 = vmatprep.mubr.msk.f32.mxu1 %vm438_vm1, %v391_v5  ;;  %v323_v2 = vadd.f32 %v1839_v62, %v1850_v11 }
  0xe6   :  { %1453 = vmatmul.mubr.msk.f32.vlgmr.msra.gmra.mrb[16].mxu1 %vm438_vm1, %v392_v8  ;;  %v394_v16 = vmax.f32 %v248_v9, 0.0  ;;  %v408_v8 = vmax.f32 %v318_v3, 0.0  ;;  %v328_v9 = vadd.f32 %v1847_v7, %v1839_v62 }
  0xe7   :  { %v393_v13 = vmax.f32 %v243_v12, 0.0  ;;  %v1396_v14 = vpop.f32.mrb[4].mxu0  ;;  %v1855_v15 = vpop.f32.mrb[4].mxu1  ;;  %v409_v5 = vmax.f32 %v323_v2, 0.0 }
  0xe8   :  { %v258_v17 = vadd.f32 %v1396_v14, %v1839_v62  ;;  %v252_v18 = vpop.f32.mrb[5].mxu0  ;;  %v1858_v19 = vpop.f32.mrb[5].mxu1  ;;  %v410_v11 = vmax.f32 %v328_v9, 0.0  ;;  %v338_v12 = vadd.f32 %v1855_v15, %v1839_v62 }
  0xe9   :  { %v253_v20 = vadd.f32 %v1839_v62, %v252_v18  ;;  %1455 = vmatprep.mubr.msk.f32.mxu1 %vm438_vm1, %v393_v13  ;;  %v333_v6 = vadd.f32 %v1839_v62, %v1858_v19 }
  0xea   :  { %1456 = vmatmul.mubr.msk.f32.gmra.mrb[18].mxu1 %vm438_vm1, %v394_v16  ;;  %v396_v24 = vmax.f32 %v258_v17, 0.0  ;;  %v412_v16 = vmax.f32 %v338_v12, 0.0 }
  0xeb   :  { %v395_v21 = vmax.f32 %v253_v20, 0.0  ;;  %v1399_v22 = vpop.f32.mrb[6].mxu0  ;;  %v1863_v23 = vpop.f32.mrb[6].mxu1  ;;  %v411_v10 = vmax.f32 %v333_v6, 0.0 }
  0xec   :  { %v268_v25 = vadd.f32 %v1399_v22, %v1839_v62  ;;  %v262_v26 = vpop.f32.mrb[7].mxu0  ;;  %v342_v27 = vpop.f32.mrb[7].mxu1  ;;  %v348_v7 = vadd.f32 %v1863_v23, %v1839_v62 }
  0xed   :  { %v263_v28 = vadd.f32 %v1839_v62, %v262_v26  ;;  %1458 = vmatprep.mubr.msk.f32.mxu1 %vm438_vm1, %v395_v21  ;;  %v343_v0 = vadd.f32 %v1839_v62, %v342_v27 }
  0xee   :  { %1459 = vmatmul.mubr.msk.f32.gmra.mrb[20].mxu1 %vm438_vm1, %v396_v24  ;;  %v398_v32 = vmax.f32 %v268_v25, 0.0  ;;  %v414_v19 = vmax.f32 %v348_v7, 0.0 }
  0xef   :  { %v397_v29 = vmax.f32 %v263_v28, 0.0  ;;  %v1402_v30 = vpop.f32.mrb[8].mxu0  ;;  %v1869_v31 = vpop.f32.mrb[8].mxu1  ;;  %v413_v13 = vmax.f32 %v343_v0, 0.0 }
  0xf0   :  { %v278_v33 = vadd.f32 %v1402_v30, %v1839_v62  ;;  %v272_v34 = vpop.f32.mrb[9].mxu0  ;;  %v352_v35 = vpop.f32.mrb[9].mxu1  ;;  %v358_v15 = vadd.f32 %v1869_v31, %v1839_v62 }
  0xf1   :  { %v273_v36 = vadd.f32 %v1839_v62, %v272_v34  ;;  %1461 = vmatprep.mubr.msk.f32.mxu1 %vm438_vm1, %v397_v29  ;;  %v353_v14 = vadd.f32 %v1839_v62, %v352_v35 }
  0xf2   :  { %1462 = vmatmul.mubr.msk.f32.gmra.mrb[22].mxu1 %vm438_vm1, %v398_v32  ;;  %v400_v40 = vmax.f32 %v278_v33, 0.0  ;;  %v416_v22 = vmax.f32 %v358_v15, 0.0  ;;  %v1935_v32 = vld [vmem:[%s2171_s4] ss:$0 sm:$0xff] }
  0xf3   :  { %v399_v37 = vmax.f32 %v273_v36, 0.0  ;;  %v1405_v38 = vpop.f32.mrb[10].mxu0  ;;  %v1875_v39 = vpop.f32.mrb[10].mxu1  ;;  %v415_v17 = vmax.f32 %v353_v14, 0.0 }
  0xf4   :  { %v288_v41 = vadd.f32 %v1405_v38, %v1839_v62  ;;  %v282_v42 = vpop.f32.mrb[11].mxu0  ;;  %v362_v43 = vpop.f32.mrb[11].mxu1  ;;  %v368_v23 = vadd.f32 %v1875_v39, %v1839_v62 }
  0xf5   :  { %v283_v44 = vadd.f32 %v1839_v62, %v282_v42  ;;  %1464 = vmatprep.mubr.msk.f32.mxu1 %vm438_vm1, %v399_v37  ;;  %v363_v18 = vadd.f32 %v1839_v62, %v362_v43 }
  0xf6   :  { %1465 = vmatmul.mubr.msk.f32.gmra.mrb[24].mxu1 %vm438_vm1, %v400_v40  ;;  %v402_v48 = vmax.f32 %v288_v41, 0.0  ;;  %v418_v26 = vmax.f32 %v368_v23, 0.0 }
  0xf7   :  { %v401_v45 = vmax.f32 %v283_v44, 0.0  ;;  %v1408_v46 = vpop.f32.mrb[12].mxu0  ;;  %v1432_v47 = vpop.f32.mrb[12].mxu1  ;;  %v417_v20 = vmax.f32 %v363_v18, 0.0 }
  0xf8   :  { %v298_v49 = vadd.f32 %v1408_v46, %v1839_v62  ;;  %v292_v50 = vpop.f32.mrb[13].mxu0  ;;  %v372_v51 = vpop.f32.mrb[13].mxu1  ;;  %v378_v27 = vadd.f32 %v1432_v47, %v1839_v62 }
  0xf9   :  { %v293_v52 = vadd.f32 %v1839_v62, %v292_v50  ;;  %1467 = vmatprep.mubr.msk.f32.mxu1 %vm438_vm1, %v401_v45  ;;  %v373_v21 = vadd.f32 %v1839_v62, %v372_v51 }
  0xfa   :  { %1468 = vmatmul.mubr.msk.f32.gmra.mrb[26].mxu1 %vm438_vm1, %v402_v48  ;;  %v404_v57 = vmax.f32 %v298_v49, 0.0  ;;  %v420_v29 = vmax.f32 %v378_v27, 0.0 }
  0xfb   :  { %v403_v53 = vmax.f32 %v293_v52, 0.0  ;;  %v1411_v54 = vpop.f32.mrb[14].mxu0  ;;  %v1435_v56 = vpop.f32.mrb[14].mxu1  ;;  %v419_v24 = vmax.f32 %v373_v21, 0.0 }
  0xfc   :  { %v308_v58 = vadd.f32 %v1411_v54, %v1839_v62  ;;  %v302_v59 = vpop.f32.mrb[15].mxu0  ;;  %v382_v60 = vpop.f32.mrb[15].mxu1  ;;  %v388_v30 = vadd.f32 %v1435_v56, %v1839_v62 }
  0xfd   :  { %v303_v61 = vadd.f32 %v1839_v62, %v302_v59  ;;  %1470 = vmatprep.mubr.msk.f32.mxu1 %vm438_vm1, %v403_v53  ;;  %v383_v25 = vadd.f32 %v1839_v62, %v382_v60 }
  0xfe   :  { %1471 = vmatmul.mubr.msk.f32.gmra.mrb[28].mxu1 %vm438_vm1, %v404_v57  ;;  %v406_v4 = vmax.f32 %v308_v58, 0.0  ;;  %v422_v31 = vmax.f32 %v388_v30, 0.0 }
  0xff   :  { %v405_v63 = vmax.f32 %v303_v61, 0.0  ;;  %v421_v28 = vmax.f32 %v383_v25, 0.0 }
 0x101   :  { %1473 = vmatprep.mubr.msk.f32.mxu1 %vm438_vm1, %v405_v63 }
 0x102   :  { %1474 = vmatmul.mubr.msk.f32.gmra.mrb[30].mxu1 %vm438_vm1, %v406_v4 }
 0x103   :  { %1476 = vmatprep.mubr.msk.f32.mxu1 %vm438_vm1, %v407_v1 }
 0x106   :  { %1477 = vmatmul.mubr.msk.f32.gmra.mrb[32].mxu1 %vm438_vm1, %v408_v8 }
 0x107   :  { %1479 = vmatprep.mubr.msk.f32.mxu1 %vm438_vm1, %v409_v5 }
 0x10a   :  { %1480 = vmatmul.mubr.msk.f32.gmra.mrb[34].mxu1 %vm438_vm1, %v410_v11 }
 0x10b   :  { %1482 = vmatprep.mubr.msk.f32.mxu1 %vm438_vm1, %v411_v10 }
 0x10e   :  { %1483 = vmatmul.mubr.msk.f32.gmra.mrb[36].mxu1 %vm438_vm1, %v412_v16 }
 0x10f   :  { %1485 = vmatprep.mubr.msk.f32.mxu1 %vm438_vm1, %v413_v13 }
 0x112   :  { %1486 = vmatmul.mubr.msk.f32.gmra.mrb[38].mxu1 %vm438_vm1, %v414_v19 }
 0x113   :  { %1488 = vmatprep.mubr.msk.f32.mxu1 %vm438_vm1, %v415_v17 }
 0x116   :  { %1489 = vmatmul.mubr.msk.f32.gmra.mrb[40].mxu1 %vm438_vm1, %v416_v22 }
 0x117   :  { %1491 = vmatprep.mubr.msk.f32.mxu1 %vm438_vm1, %v417_v20 }
 0x11a   :  { %1492 = vmatmul.mubr.msk.f32.gmra.mrb[42].mxu1 %vm438_vm1, %v418_v26 }
 0x11b   :  { %1494 = vmatprep.mubr.msk.f32.mxu1 %vm438_vm1, %v419_v24 }
 0x11e   :  { %1495 = vmatmul.mubr.msk.f32.gmra.mrb[44].mxu1 %vm438_vm1, %v420_v29 }
 0x11f   :  { %1497 = vmatprep.mubr.msk.f32.mxu1 %vm438_vm1, %v421_v28 }
 0x122   :  { %1498 = vmatmul.mubr.msk.f32.gmra.mrb[46].mxu1 %vm438_vm1, %v422_v31 }
 0x1b9   :  { %v1454_v33 = vpop.f32.mrb[16].mxu1 }
 0x1ba   :  { %v607_v34 = vadd.f32 %v1454_v33, %v1935_v32  ;;  %v601_v35 = vpop.f32.mrb[17].mxu1 }
 0x1bb   :  { %v602_v36 = vadd.f32 %v1935_v32, %v601_v35 }
 0x1bc   :  { %v761_v38 = vmax.f32 %v607_v34, 0.0 }
 0x1bd   :  { %v760_v37 = vmax.f32 %v602_v36, 0.0  ;;  %v1457_v62 = vpop.f32.mrb[18].mxu1 }
 0x1be   :  { %v617_v39 = vadd.f32 %v1457_v62, %v1935_v32  ;;  %v611_v40 = vpop.f32.mrb[19].mxu1 }
 0x1bf   :  { %v612_v41 = vadd.f32 %v1935_v32, %v611_v40  ;;  %1516 = vmatprep.mubr.msk.f32.mxu0 %vm438_vm1, %v760_v37 }
 0x1c0   :  { %1517 = vmatmul.mubr.msk.f32.vlgmr.msra.gmra.mrb[16].mxu0 %vm438_vm1, %v761_v38  ;;  %v763_v44 = vmax.f32 %v617_v39, 0.0 }
 0x1c1   :  { %v762_v42 = vmax.f32 %v612_v41, 0.0  ;;  %v1460_v43 = vpop.f32.mrb[20].mxu1 }
 0x1c2   :  { %v627_v45 = vadd.f32 %v1460_v43, %v1935_v32  ;;  %v621_v46 = vpop.f32.mrb[21].mxu1 }
 0x1c3   :  { %v622_v47 = vadd.f32 %v1935_v32, %v621_v46  ;;  %1519 = vmatprep.mubr.msk.f32.mxu0 %vm438_vm1, %v762_v42 }
 0x1c4   :  { %1520 = vmatmul.mubr.msk.f32.gmra.mrb[18].mxu0 %vm438_vm1, %v763_v44  ;;  %v765_v50 = vmax.f32 %v627_v45, 0.0 }
 0x1c5   :  { %v764_v48 = vmax.f32 %v622_v47, 0.0  ;;  %v1463_v49 = vpop.f32.mrb[22].mxu1 }
 0x1c6   :  { %v637_v51 = vadd.f32 %v1463_v49, %v1935_v32  ;;  %v631_v52 = vpop.f32.mrb[23].mxu1 }
 0x1c7   :  { %v632_v53 = vadd.f32 %v1935_v32, %v631_v52  ;;  %1522 = vmatprep.mubr.msk.f32.mxu0 %vm438_vm1, %v764_v48 }
 0x1c8   :  { %1523 = vmatmul.mubr.msk.f32.gmra.mrb[20].mxu0 %vm438_vm1, %v765_v50  ;;  %v767_v56 = vmax.f32 %v637_v51, 0.0 }
 0x1c9   :  { %v766_v54 = vmax.f32 %v632_v53, 0.0  ;;  %v1466_v55 = vpop.f32.mrb[24].mxu1 }
 0x1ca   :  { %v647_v57 = vadd.f32 %v1466_v55, %v1935_v32  ;;  %v641_v58 = vpop.f32.mrb[25].mxu1 }
 0x1cb   :  { %v642_v59 = vadd.f32 %v1935_v32, %v641_v58  ;;  %1525 = vmatprep.mubr.msk.f32.mxu0 %vm438_vm1, %v766_v54 }
 0x1cc   :  { %1526 = vmatmul.mubr.msk.f32.gmra.mrb[22].mxu0 %vm438_vm1, %v767_v56  ;;  %v769_v63 = vmax.f32 %v647_v57, 0.0 }
 0x1cd   :  { %v768_v60 = vmax.f32 %v642_v59, 0.0  ;;  %v1469_v61 = vpop.f32.mrb[26].mxu1 }
 0x1ce   :  { %v657_v1 = vadd.f32 %v1469_v61, %v1935_v32  ;;  %v651_v2 = vpop.f32.mrb[27].mxu1 }
 0x1cf   :  { %v652_v4 = vadd.f32 %v1935_v32, %v651_v2  ;;  %1528 = vmatprep.mubr.msk.f32.mxu0 %vm438_vm1, %v768_v60 }
 0x1d0   :  { %1529 = vmatmul.mubr.msk.f32.gmra.mrb[24].mxu0 %vm438_vm1, %v769_v63  ;;  %v771_v6 = vmax.f32 %v657_v1, 0.0 }
 0x1d1   :  { %v770_v3 = vmax.f32 %v652_v4, 0.0  ;;  %v1472_v5 = vpop.f32.mrb[28].mxu1  ;;  %v2004_v4 = vld [vmem:[%s2172_s6] ss:$0 sm:$0xff] }
 0x1d2   :  { %v667_v8 = vadd.f32 %v1472_v5, %v1935_v32  ;;  %v661_v9 = vpop.f32.mrb[29].mxu1 }
 0x1d3   :  { %v662_v10 = vadd.f32 %v1935_v32, %v661_v9  ;;  %1531 = vmatprep.mubr.msk.f32.mxu0 %vm438_vm1, %v770_v3 }
 0x1d4   :  { %1532 = vmatmul.mubr.msk.f32.gmra.mrb[26].mxu0 %vm438_vm1, %v771_v6  ;;  %v773_v12 = vmax.f32 %v667_v8, 0.0 }
 0x1d5   :  { %v772_v0 = vmax.f32 %v662_v10, 0.0  ;;  %v1475_v11 = vpop.f32.mrb[30].mxu1 }
 0x1d6   :  { %v677_v13 = vadd.f32 %v1475_v11, %v1935_v32  ;;  %v671_v14 = vpop.f32.mrb[31].mxu1 }
 0x1d7   :  { %v672_v16 = vadd.f32 %v1935_v32, %v671_v14  ;;  %1534 = vmatprep.mubr.msk.f32.mxu0 %vm438_vm1, %v772_v0 }
 0x1d8   :  { %1535 = vmatmul.mubr.msk.f32.gmra.mrb[28].mxu0 %vm438_vm1, %v773_v12  ;;  %v775_v18 = vmax.f32 %v677_v13, 0.0 }
 0x1d9   :  { %v774_v7 = vmax.f32 %v672_v16, 0.0  ;;  %v1478_v17 = vpop.f32.mrb[32].mxu1 }
 0x1da   :  { %v687_v19 = vadd.f32 %v1478_v17, %v1935_v32  ;;  %v681_v15 = vpop.f32.mrb[33].mxu1 }
 0x1db   :  { %v682_v20 = vadd.f32 %v1935_v32, %v681_v15  ;;  %1537 = vmatprep.mubr.msk.f32.mxu0 %vm438_vm1, %v774_v7 }
 0x1dc   :  { %1538 = vmatmul.mubr.msk.f32.gmra.mrb[30].mxu0 %vm438_vm1, %v775_v18  ;;  %v777_v23 = vmax.f32 %v687_v19, 0.0 }
 0x1dd   :  { %v776_v21 = vmax.f32 %v682_v20, 0.0  ;;  %v1481_v22 = vpop.f32.mrb[34].mxu1 }
 0x1de   :  { %v697_v24 = vadd.f32 %v1481_v22, %v1935_v32  ;;  %v691_v25 = vpop.f32.mrb[35].mxu1 }
 0x1df   :  { %v692_v26 = vadd.f32 %v1935_v32, %v691_v25  ;;  %1540 = vmatprep.mubr.msk.f32.mxu0 %vm438_vm1, %v776_v21 }
 0x1e0   :  { %1541 = vmatmul.mubr.msk.f32.gmra.mrb[32].mxu0 %vm438_vm1, %v777_v23  ;;  %v779_v29 = vmax.f32 %v697_v24, 0.0 }
 0x1e1   :  { %v778_v27 = vmax.f32 %v692_v26, 0.0  ;;  %v1484_v28 = vpop.f32.mrb[36].mxu1 }
 0x1e2   :  { %v707_v30 = vadd.f32 %v1484_v28, %v1935_v32  ;;  %v701_v31 = vpop.f32.mrb[37].mxu1 }
 0x1e3   :  { %v702_v33 = vadd.f32 %v1935_v32, %v701_v31  ;;  %1543 = vmatprep.mubr.msk.f32.mxu0 %vm438_vm1, %v778_v27 }
 0x1e4   :  { %1544 = vmatmul.mubr.msk.f32.gmra.mrb[34].mxu0 %vm438_vm1, %v779_v29  ;;  %v781_v36 = vmax.f32 %v707_v30, 0.0 }
 0x1e5   :  { %v780_v34 = vmax.f32 %v702_v33, 0.0  ;;  %v1487_v35 = vpop.f32.mrb[38].mxu1 }
 0x1e6   :  { %v717_v37 = vadd.f32 %v1487_v35, %v1935_v32  ;;  %v711_v62 = vpop.f32.mrb[39].mxu1 }
 0x1e7   :  { %v712_v38 = vadd.f32 %v1935_v32, %v711_v62  ;;  %1546 = vmatprep.mubr.msk.f32.mxu0 %vm438_vm1, %v780_v34 }
 0x1e8   :  { %1547 = vmatmul.mubr.msk.f32.gmra.mrb[36].mxu0 %vm438_vm1, %v781_v36  ;;  %v783_v41 = vmax.f32 %v717_v37, 0.0 }
 0x1e9   :  { %v782_v39 = vmax.f32 %v712_v38, 0.0  ;;  %v1490_v40 = vpop.f32.mrb[40].mxu1 }
 0x1ea   :  { %v727_v42 = vadd.f32 %v1490_v40, %v1935_v32  ;;  %v721_v43 = vpop.f32.mrb[41].mxu1 }
 0x1eb   :  { %v722_v44 = vadd.f32 %v1935_v32, %v721_v43  ;;  %1549 = vmatprep.mubr.msk.f32.mxu0 %vm438_vm1, %v782_v39 }
 0x1ec   :  { %1550 = vmatmul.mubr.msk.f32.gmra.mrb[38].mxu0 %vm438_vm1, %v783_v41  ;;  %v785_v47 = vmax.f32 %v727_v42, 0.0 }
 0x1ed   :  { %v784_v45 = vmax.f32 %v722_v44, 0.0  ;;  %v1493_v46 = vpop.f32.mrb[42].mxu1 }
 0x1ee   :  { %v737_v48 = vadd.f32 %v1493_v46, %v1935_v32  ;;  %v731_v49 = vpop.f32.mrb[43].mxu1 }
 0x1ef   :  { %v732_v50 = vadd.f32 %v1935_v32, %v731_v49  ;;  %1552 = vmatprep.mubr.msk.f32.mxu0 %vm438_vm1, %v784_v45 }
 0x1f0   :  { %1553 = vmatmul.mubr.msk.f32.gmra.mrb[40].mxu0 %vm438_vm1, %v785_v47  ;;  %v787_v53 = vmax.f32 %v737_v48, 0.0 }
 0x1f1   :  { %v786_v51 = vmax.f32 %v732_v50, 0.0  ;;  %v1496_v52 = vpop.f32.mrb[44].mxu1 }
 0x1f2   :  { %v747_v54 = vadd.f32 %v1496_v52, %v1935_v32  ;;  %v741_v55 = vpop.f32.mrb[45].mxu1 }
 0x1f3   :  { %v742_v56 = vadd.f32 %v1935_v32, %v741_v55  ;;  %1555 = vmatprep.mubr.msk.f32.mxu0 %vm438_vm1, %v786_v51 }
 0x1f4   :  { %1556 = vmatmul.mubr.msk.f32.gmra.mrb[42].mxu0 %vm438_vm1, %v787_v53  ;;  %v789_v59 = vmax.f32 %v747_v54, 0.0 }
 0x1f5   :  { %v788_v57 = vmax.f32 %v742_v56, 0.0  ;;  %v1499_v58 = vpop.f32.mrb[46].mxu1 }
 0x1f6   :  { %v757_v60 = vadd.f32 %v1499_v58, %v1935_v32  ;;  %v751_v61 = vpop.f32.mrb[47].mxu1 }
 0x1f7   :  { %v752_v63 = vadd.f32 %v1935_v32, %v751_v61  ;;  %1558 = vmatprep.mubr.msk.f32.mxu0 %vm438_vm1, %v788_v57 }
 0x1f8   :  { %1559 = vmatmul.mubr.msk.f32.gmra.mrb[44].mxu0 %vm438_vm1, %v789_v59  ;;  %v791_v2 = vmax.f32 %v757_v60, 0.0 }
 0x1f9   :  { %v790_v1 = vmax.f32 %v752_v63, 0.0 }
 0x1fb   :  { %1561 = vmatprep.mubr.msk.f32.mxu0 %vm438_vm1, %v790_v1 }
 0x1fc   :  { %1562 = vmatmul.mubr.msk.f32.gmra.mrb[46].mxu0 %vm438_vm1, %v791_v2 }
 0x293   :  { %v1518_v3 = vpop.f32.mrb[16].mxu0 }
 0x294   :  { %v975_v5 = vadd.f32 %v1518_v3, %v2004_v4  ;;  %v969_v32 = vpop.f32.mrb[17].mxu0 }
 0x295   :  { %v970_v6 = vadd.f32 %v2004_v4, %v969_v32 }
 0x296   :  { %1130 = vst.msk [vmem:[%s2173_s7 + $0x8] sm:$0xff] %vm1128_vm2, %v975_v5 }
 0x297   :  { %1129 = vst.msk [vmem:[%s2173_s7] sm:$0xff] %vm1128_vm2, %v970_v6  ;;  %v1521_v8 = vpop.f32.mrb[18].mxu0 }
 0x298   :  { %v985_v9 = vadd.f32 %v1521_v8, %v2004_v4  ;;  %v979_v10 = vpop.f32.mrb[19].mxu0 }
 0x299   :  { %v980_v0 = vadd.f32 %v2004_v4, %v979_v10 }
 0x29a   :  { %1132 = vst.msk [vmem:[%s2173_s7 + $0x18] sm:$0xff] %vm1128_vm2, %v985_v9 }
 0x29b   :  { %1131 = vst.msk [vmem:[%s2173_s7 + $0x10] sm:$0xff] %vm1128_vm2, %v980_v0  ;;  %v1524_v11 = vpop.f32.mrb[20].mxu0 }
 0x29c   :  { %v995_v12 = vadd.f32 %v1524_v11, %v2004_v4  ;;  %v989_v13 = vpop.f32.mrb[21].mxu0 }
 0x29d   :  { %v990_v14 = vadd.f32 %v2004_v4, %v989_v13 }
 0x29e   :  { %1134 = vst.msk [vmem:[%s2173_s7 + $0x28] sm:$0xff] %vm1128_vm2, %v995_v12 }
 0x29f   :  { %1133 = vst.msk [vmem:[%s2173_s7 + $0x20] sm:$0xff] %vm1128_vm2, %v990_v14  ;;  %v1527_v16 = vpop.f32.mrb[22].mxu0 }
 0x2a0   :  { %v1005_v7 = vadd.f32 %v1527_v16, %v2004_v4  ;;  %v999_v17 = vpop.f32.mrb[23].mxu0 }
 0x2a1   :  { %v1000_v18 = vadd.f32 %v2004_v4, %v999_v17 }
 0x2a2   :  { %1136 = vst.msk [vmem:[%s2173_s7 + $0x38] sm:$0xff] %vm1128_vm2, %v1005_v7 }
 0x2a3   :  { %1135 = vst.msk [vmem:[%s2173_s7 + $0x30] sm:$0xff] %vm1128_vm2, %v1000_v18  ;;  %v1530_v19 = vpop.f32.mrb[24].mxu0 }
 0x2a4   :  { %v1015_v15 = vadd.f32 %v1530_v19, %v2004_v4  ;;  %v1009_v20 = vpop.f32.mrb[25].mxu0 }
 0x2a5   :  { %v1010_v21 = vadd.f32 %v2004_v4, %v1009_v20 }
 0x2a6   :  { %1138 = vst.msk [vmem:[%s2173_s7 + $0x48] sm:$0xff] %vm1128_vm2, %v1015_v15 }
 0x2a7   :  { %1137 = vst.msk [vmem:[%s2173_s7 + $0x40] sm:$0xff] %vm1128_vm2, %v1010_v21  ;;  %v1533_v22 = vpop.f32.mrb[26].mxu0 }
 0x2a8   :  { %v1025_v23 = vadd.f32 %v1533_v22, %v2004_v4  ;;  %v1019_v24 = vpop.f32.mrb[27].mxu0 }
 0x2a9   :  { %v1020_v25 = vadd.f32 %v2004_v4, %v1019_v24 }
 0x2aa   :  { %1140 = vst.msk [vmem:[%s2173_s7 + $0x58] sm:$0xff] %vm1128_vm2, %v1025_v23 }
 0x2ab   :  { %1139 = vst.msk [vmem:[%s2173_s7 + $0x50] sm:$0xff] %vm1128_vm2, %v1020_v25  ;;  %v1536_v26 = vpop.f32.mrb[28].mxu0 }
 0x2ac   :  { %v1035_v27 = vadd.f32 %v1536_v26, %v2004_v4  ;;  %v1029_v28 = vpop.f32.mrb[29].mxu0 }
 0x2ad   :  { %v1030_v29 = vadd.f32 %v2004_v4, %v1029_v28 }
 0x2ae   :  { %1142 = vst.msk [vmem:[%s2173_s7 + $0x68] sm:$0xff] %vm1128_vm2, %v1035_v27 }
 0x2af   :  { %1141 = vst.msk [vmem:[%s2173_s7 + $0x60] sm:$0xff] %vm1128_vm2, %v1030_v29  ;;  %v1539_v30 = vpop.f32.mrb[30].mxu0 }
 0x2b0   :  { %v1045_v31 = vadd.f32 %v1539_v30, %v2004_v4  ;;  %v1039_v33 = vpop.f32.mrb[31].mxu0 }
 0x2b1   :  { %v1040_v34 = vadd.f32 %v2004_v4, %v1039_v33 }
 0x2b2   :  { %1144 = vst.msk [vmem:[%s2173_s7 + $0x78] sm:$0xff] %vm1128_vm2, %v1045_v31 }
 0x2b3   :  { %1143 = vst.msk [vmem:[%s2173_s7 + $0x70] sm:$0xff] %vm1128_vm2, %v1040_v34  ;;  %v1542_v35 = vpop.f32.mrb[32].mxu0 }
 0x2b4   :  { %v1055_v36 = vadd.f32 %v1542_v35, %v2004_v4  ;;  %v1049_v37 = vpop.f32.mrb[33].mxu0 }
 0x2b5   :  { %v1050_v62 = vadd.f32 %v2004_v4, %v1049_v37 }
 0x2b6   :  { %1146 = vst.msk [vmem:[%s2173_s7 + $0x88] sm:$0xff] %vm1128_vm2, %v1055_v36 }
 0x2b7   :  { %1145 = vst.msk [vmem:[%s2173_s7 + $0x80] sm:$0xff] %vm1128_vm2, %v1050_v62  ;;  %v1545_v38 = vpop.f32.mrb[34].mxu0 }
 0x2b8   :  { %v1065_v39 = vadd.f32 %v1545_v38, %v2004_v4  ;;  %v1059_v40 = vpop.f32.mrb[35].mxu0 }
 0x2b9   :  { %v1060_v41 = vadd.f32 %v2004_v4, %v1059_v40 }
 0x2ba   :  { %1148 = vst.msk [vmem:[%s2173_s7 + $0x98] sm:$0xff] %vm1128_vm2, %v1065_v39 }
 0x2bb   :  { %1147 = vst.msk [vmem:[%s2173_s7 + $0x90] sm:$0xff] %vm1128_vm2, %v1060_v41  ;;  %v1548_v42 = vpop.f32.mrb[36].mxu0 }
 0x2bc   :  { %v1075_v43 = vadd.f32 %v1548_v42, %v2004_v4  ;;  %v1069_v44 = vpop.f32.mrb[37].mxu0 }
 0x2bd   :  { %v1070_v45 = vadd.f32 %v2004_v4, %v1069_v44 }
 0x2be   :  { %1150 = vst.msk [vmem:[%s2173_s7 + $0xa8] sm:$0xff] %vm1128_vm2, %v1075_v43 }
 0x2bf   :  { %1149 = vst.msk [vmem:[%s2173_s7 + $0xa0] sm:$0xff] %vm1128_vm2, %v1070_v45  ;;  %v1551_v46 = vpop.f32.mrb[38].mxu0 }
 0x2c0   :  { %v1085_v47 = vadd.f32 %v1551_v46, %v2004_v4  ;;  %v1079_v48 = vpop.f32.mrb[39].mxu0 }
 0x2c1   :  { %v1080_v49 = vadd.f32 %v2004_v4, %v1079_v48 }
 0x2c2   :  { %1152 = vst.msk [vmem:[%s2173_s7 + $0xb8] sm:$0xff] %vm1128_vm2, %v1085_v47 }
 0x2c3   :  { %1151 = vst.msk [vmem:[%s2173_s7 + $0xb0] sm:$0xff] %vm1128_vm2, %v1080_v49  ;;  %v1554_v50 = vpop.f32.mrb[40].mxu0 }
 0x2c4   :  { %v1095_v51 = vadd.f32 %v1554_v50, %v2004_v4  ;;  %v1089_v52 = vpop.f32.mrb[41].mxu0 }
 0x2c5   :  { %v1090_v53 = vadd.f32 %v2004_v4, %v1089_v52 }
 0x2c6   :  { %1154 = vst.msk [vmem:[%s2173_s7 + $0xc8] sm:$0xff] %vm1128_vm2, %v1095_v51 }
 0x2c7   :  { %1153 = vst.msk [vmem:[%s2173_s7 + $0xc0] sm:$0xff] %vm1128_vm2, %v1090_v53  ;;  %v1557_v54 = vpop.f32.mrb[42].mxu0 }
 0x2c8   :  { %v1105_v55 = vadd.f32 %v1557_v54, %v2004_v4  ;;  %v1099_v56 = vpop.f32.mrb[43].mxu0 }
 0x2c9   :  { %v1100_v57 = vadd.f32 %v2004_v4, %v1099_v56 }
 0x2ca   :  { %1156 = vst.msk [vmem:[%s2173_s7 + $0xd8] sm:$0xff] %vm1128_vm2, %v1105_v55 }
 0x2cb   :  { %1155 = vst.msk [vmem:[%s2173_s7 + $0xd0] sm:$0xff] %vm1128_vm2, %v1100_v57  ;;  %v1560_v58 = vpop.f32.mrb[44].mxu0 }
 0x2cc   :  { %v1115_v59 = vadd.f32 %v1560_v58, %v2004_v4  ;;  %v1109_v60 = vpop.f32.mrb[45].mxu0 }
 0x2cd   :  { %v1110_v61 = vadd.f32 %v2004_v4, %v1109_v60 }
 0x2ce   :  { %1158 = vst.msk [vmem:[%s2173_s7 + $0xe8] sm:$0xff] %vm1128_vm2, %v1115_v59 }
 0x2cf   :  { %1157 = vst.msk [vmem:[%s2173_s7 + $0xe0] sm:$0xff] %vm1128_vm2, %v1110_v61  ;;  %v1563_v63 = vpop.f32.mrb[46].mxu0 }
 0x2d0   :  { %v1125_v1 = vadd.f32 %v1563_v63, %v2004_v4  ;;  %v1119_v2 = vpop.f32.mrb[47].mxu0 }
 0x2d1   :  { %v1120_v3 = vadd.f32 %v2004_v4, %v1119_v2 }
 0x2d2   :  { %1160 = vst.msk [vmem:[%s2173_s7 + $0xf8] sm:$0xff] %vm1128_vm2, %v1125_v1 }
 0x2d3   :  { %1159 = vst.msk [vmem:[%s2173_s7 + $0xf0] sm:$0xff] %vm1128_vm2, %v1120_v3 }

</bundles_post_ra>
